<compile_context>
chip_gen: v7x
topology: tpu7x:2x2x1
jax: 0.10.0
libtpu: 0.0.40
codegen_flags: <defaults>
</compile_context>

<pallas_src>
import math
import jax
import jax.numpy as jnp
from jax import lax
from jax.experimental import pallas as pl
from jax.experimental.pallas import tpu as pltpu


def _pick_tile(n: int, pref: int) -> int:
    """Largest 'nice' tile (multiple of 8) dividing n, capped at pref; else full n."""
    if n <= pref:
        return n
    for t in (pref, 256, 128, 64, 32, 16, 8):
        if t <= pref and n % t == 0:
            return t
    return n


# ---------------------------------------------------------------------------
# Stage 1: fused QKV projection
# ---------------------------------------------------------------------------
def _make_qkv_kernel(dim_embed: int):
    E = dim_embed

    def kernel(x_ref, w_ref, b_ref, q_ref, k_ref, v_ref):
        # x block: (TR, E) bf16; w: (E, 3E) bf16; b: (1, 3E) f32.
        y = jnp.dot(x_ref[...], w_ref[...],
                    preferred_element_type=jnp.float32) + b_ref[...]   # (TR, 3E) f32
        q_ref[...] = y[:, 0:E].astype(q_ref.dtype)
        k_ref[...] = y[:, E:2 * E].astype(k_ref.dtype)
        v_ref[...] = y[:, 2 * E:3 * E].astype(v_ref.dtype)

    return kernel


# ---------------------------------------------------------------------------
# Stage 2: per-head attention + output projection
# ---------------------------------------------------------------------------
def _make_attn_kernel(dim_embed: int, num_heads: int):
    dim_head = dim_embed // num_heads

    def kernel(q_ref, k_ref, v_ref, wo_ref, bo_ref, o_ref, ctx_ref):
        # q block: (1, TQ, E) bf16 (pre-scaled by 1/sqrt(Dh) via the folded Wq)
        # k/v blocks: (1, S, E) bf16; wo: (E, E) bf16; bo: (1, E) f32.
        q = q_ref[0]
        k = k_ref[0]
        v = v_ref[0]

        # Static loop over heads; each head's (TQ, S) scores die once its
        # context slice is stored into the VMEM scratch slab (no concatenate).
        for h in range(num_heads):
            lo = h * dim_head
            hi = lo + dim_head
            # (TQ, Dh) x (S, Dh) -> (TQ, S): contract on Dh, no explicit k.T.
            s = lax.dot_general(
                q[:, lo:hi], k[:, lo:hi],
                dimension_numbers=(((1,), (1,)), ((), ())),
                preferred_element_type=jnp.float32)
            m = jnp.max(s, axis=-1, keepdims=True)
            e = jnp.exp(s - m)
            inv = pl.reciprocal(jnp.sum(e, axis=-1, keepdims=True), approx=True)
            p = e * inv
            ctx_ref[:, lo:hi] = jnp.dot(p.astype(jnp.bfloat16), v[:, lo:hi],
                                        preferred_element_type=jnp.float32)

        out = jnp.dot(ctx_ref[...].astype(jnp.bfloat16), wo_ref[...],
                      preferred_element_type=jnp.float32) + bo_ref[...]   # (TQ, E)
        o_ref[0] = out.astype(o_ref.dtype)

    return kernel


# ---------------------------------------------------------------------------
# Wrapper
# ---------------------------------------------------------------------------
def multihead_forward(x, params, num_heads: int):
    """x: (B, S, E) float32; params: dict of weights (E,E) and biases (1,E)."""
    B, S, E = x.shape
    H = num_heads
    Dh = E // H
    scale = 1.0 / math.sqrt(Dh)
    bf16 = jnp.bfloat16
    f32 = jnp.float32

    # Fuse QKV weights; fold 1/sqrt(Dh) into the query projection (free at
    # trace time).  Cast matmul weights to bf16 (halves DMA, 2x+ MXU rate).
    wqkv = jnp.concatenate(
        [params["wq"] * scale, params["wk"], params["wv"]], axis=1).astype(bf16)
    bqkv = jnp.concatenate(
        [params["bq"] * scale, params["bk"], params["bv"]], axis=1).astype(f32)
    wo = params["wo"].astype(bf16)
    bo = params["bo"].astype(f32)

    x2 = x.reshape(B * S, E).astype(bf16)

    # ---- Stage 1: fused QKV projection ------------------------------------
    R = B * S
    TR = _pick_tile(R, 512)
    nr = R // TR

    cost1 = pl.CostEstimate(
        flops=2 * R * E * 3 * E,
        transcendentals=0,
        bytes_accessed=R * E * 2 + E * 3 * E * 2 + R * 3 * E * 4 + 3 * R * E * 2)

    q, k, v = pl.pallas_call(
        _make_qkv_kernel(E),
        out_shape=tuple(jax.ShapeDtypeStruct((R, E), bf16) for _ in range(3)),
        grid_spec=pltpu.PrefetchScalarGridSpec(
            num_scalar_prefetch=0,
            grid=(nr,),
            in_specs=[
                pl.BlockSpec((TR, E), lambda r: (r, 0)),        # x rows
                pl.BlockSpec((E, 3 * E), lambda r: (0, 0)),     # fused Wqkv
                pl.BlockSpec((1, 3 * E), lambda r: (0, 0)),     # fused bias
            ],
            out_specs=[pl.BlockSpec((TR, E), lambda r: (r, 0)) for _ in range(3)],
        ),
        compiler_params=pltpu.CompilerParams(dimension_semantics=("parallel",)),
        cost_estimate=cost1,
    )(x2, wqkv, bqkv)

    q = q.reshape(B, S, E)
    k = k.reshape(B, S, E)
    v = v.reshape(B, S, E)

    # ---- Stage 2: attention + output projection ----------------------------
    TQ = _pick_tile(S, 256)
    nq = S // TQ

    cost2 = pl.CostEstimate(
        flops=B * (4 * S * S * E + 2 * S * E * E),
        transcendentals=B * H * S * S,
        bytes_accessed=3 * B * S * E * 2 + E * E * 2 + B * S * E * 4)

    out = pl.pallas_call(
        _make_attn_kernel(E, H),
        out_shape=jax.ShapeDtypeStruct((B, S, E), x.dtype),
        grid_spec=pltpu.PrefetchScalarGridSpec(
            num_scalar_prefetch=0,
            grid=(B, nq),
            in_specs=[
                pl.BlockSpec((1, TQ, E), lambda b, i: (b, i, 0)),  # Q tile
                pl.BlockSpec((1, S, E), lambda b, i: (b, 0, 0)),   # K (full seq)
                pl.BlockSpec((1, S, E), lambda b, i: (b, 0, 0)),   # V (full seq)
                pl.BlockSpec((E, E), lambda b, i: (0, 0)),         # Wo
                pl.BlockSpec((1, E), lambda b, i: (0, 0)),         # bo
            ],
            out_specs=pl.BlockSpec((1, TQ, E), lambda b, i: (b, i, 0)),
            scratch_shapes=[pltpu.VMEM((TQ, E), jnp.float32)],     # context slab
        ),
        compiler_params=pltpu.CompilerParams(
            dimension_semantics=("parallel", "parallel")),
        cost_estimate=cost2,
    )(q, k, v, wo, bo)

    return out


# ---------------------------------------------------------------------------
# Pure-JAX reference (reproduces the PyTorch MultiHead forward, eval mode)
# ---------------------------------------------------------------------------
def _reference_forward(x, params, num_heads: int):
    B, S, E = x.shape
    Dh = E // num_heads
    q = x @ params["wq"] + params["bq"]
    k = x @ params["wk"] + params["bk"]
    v = x @ params["wv"] + params["bv"]

    def split(t):  # (B, S, E) -> (B, H, S, Dh)
        return t.reshape(B, S, num_heads, Dh).transpose(0, 2, 1, 3)

    qh, kh, vh = split(q), split(k), split(v)
    scores = jnp.einsum("bhqd,bhkd->bhqk", qh, kh) / math.sqrt(Dh)
    p = jax.nn.softmax(scores, axis=-1)
    ctx = jnp.einsum("bhqk,bhkd->bhqd", p, vh)
    ctx = ctx.transpose(0, 2, 1, 3).reshape(B, S, E)
    return ctx @ params["wo"] + params["bo"]


if __name__ == "__main__":
    # Small shapes consistent with the module: dim_embed divisible by num_heads.
    B, S, E, H = 2, 8, 32, 4
    key = jax.random.PRNGKey(0)
    kx, kq, kk, kv, ko, kbq, kbk, kbv, kbo = jax.random.split(key, 9)

    x = jax.random.normal(kx, (B, S, E), dtype=jnp.float32)

    bound = 1.0 / math.sqrt(E)
    params = {
        "wq": jax.random.uniform(kq, (E, E), jnp.float32, -bound, bound),
        "wk": jax.random.uniform(kk, (E, E), jnp.float32, -bound, bound),
        "wv": jax.random.uniform(kv, (E, E), jnp.float32, -bound, bound),
        "wo": jax.random.uniform(ko, (E, E), jnp.float32, -bound, bound),
        "bq": jax.random.uniform(kbq, (1, E), jnp.float32, -bound, bound),
        "bk": jax.random.uniform(kbk, (1, E), jnp.float32, -bound, bound),
        "bv": jax.random.uniform(kbv, (1, E), jnp.float32, -bound, bound),
        "bo": jax.random.uniform(kbo, (1, E), jnp.float32, -bound, bound),
    }

    out = jax.jit(multihead_forward, static_argnums=2)(x, params, H)
    out = jax.block_until_ready(out)

    ref = _reference_forward(x, params, H)
    assert out.shape == (B, S, E)
    # bf16 MXU inputs + approx reciprocal => slightly looser tolerance vs f32 ref.
    max_err = float(jnp.max(jnp.abs(out.astype(jnp.float32) - ref)))
    assert max_err < 3e-2, f"mismatch vs reference: max abs err = {max_err}"

    print("KERNEL_OK")
</pallas_src>

<mosaic_0001>
module attributes {stable_mosaic.version = 11 : i64} {
  func.func @kernel(%arg0: i32, %arg1: memref<16x32xbf16, #tpu.memory_space<vmem>>, %arg2: memref<32x96xbf16, #tpu.memory_space<vmem>>, %arg3: memref<1x96xf32, #tpu.memory_space<vmem>>, %arg4: memref<16x32xbf16, #tpu.memory_space<vmem>>, %arg5: memref<16x32xbf16, #tpu.memory_space<vmem>>, %arg6: memref<16x32xbf16, #tpu.memory_space<vmem>>) attributes {dimension_semantics = [#tpu.dimension_semantics<parallel>], iteration_bounds = array<i64: 1>, scalar_prefetch = 0 : i64, scratch_operands = 0 : i64, tpu.core_type = #tpu.core_type<tc>, window_params = [{transform_indices = @transform_0, window_bounds = array<i64: 16, 32>}, {pipeline_mode = #tpu.pipeline_mode<synchronous>, transform_indices = @transform_1, window_bounds = array<i64: 32, 96>}, {pipeline_mode = #tpu.pipeline_mode<synchronous>, transform_indices = @transform_2, window_bounds = array<i64: 1, 96>}, {transform_indices = @transform_3, window_bounds = array<i64: 16, 32>}, {transform_indices = @transform_4, window_bounds = array<i64: 16, 32>}, {transform_indices = @transform_5, window_bounds = array<i64: 16, 32>}]} {
    %c0 = arith.constant 0 : index
    %c0_0 = arith.constant 0 : index
    %0 = vector.load %arg1[%c0, %c0_0] : memref<16x32xbf16, #tpu.memory_space<vmem>>, vector<16x32xbf16>
    %c0_1 = arith.constant 0 : index
    %c0_2 = arith.constant 0 : index
    %1 = vector.load %arg2[%c0_1, %c0_2] : memref<32x96xbf16, #tpu.memory_space<vmem>>, vector<32x96xbf16>
    %cst = arith.constant dense<0.000000e+00> : vector<16x96xf32>
    %2 = tpu.matmul %0, %1, %cst {dimension_numbers = #tpu.dot_dimension_numbers<[1], [0], [0], [1], [0, 0, 1, 1], [], []>} : vector<16x32xbf16>, vector<32x96xbf16>, vector<16x96xf32> -> vector<16x96xf32>
    %c0_3 = arith.constant 0 : index
    %c0_4 = arith.constant 0 : index
    %3 = vector.load %arg3[%c0_3, %c0_4] : memref<1x96xf32, #tpu.memory_space<vmem>>, vector<1x96xf32>
    %4 = vector.broadcast %3 : vector<1x96xf32> to vector<16x96xf32>
    %5 = arith.addf %2, %4 : vector<16x96xf32>
    %6 = vector.extract_strided_slice %5 {offsets = [0, 0], sizes = [16, 32], strides = [1, 1]} : vector<16x96xf32> to vector<16x32xf32>
    %7 = arith.truncf %6 : vector<16x32xf32> to vector<16x32xbf16>
    %c0_5 = arith.constant 0 : index
    %c0_6 = arith.constant 0 : index
    %8 = vector.load %arg4[%c0_5, %c0_6] : memref<16x32xbf16, #tpu.memory_space<vmem>>, vector<16x32xbf16>
    tpu.vector_store %arg4[%c0_5, %c0_6], %7 {strides = array<i32>} : memref<16x32xbf16, #tpu.memory_space<vmem>>, vector<16x32xbf16>,
    %9 = vector.extract_strided_slice %5 {offsets = [0, 32], sizes = [16, 32], strides = [1, 1]} : vector<16x96xf32> to vector<16x32xf32>
    %10 = arith.truncf %9 : vector<16x32xf32> to vector<16x32xbf16>
    %c0_7 = arith.constant 0 : index
    %c0_8 = arith.constant 0 : index
    %11 = vector.load %arg5[%c0_7, %c0_8] : memref<16x32xbf16, #tpu.memory_space<vmem>>, vector<16x32xbf16>
    tpu.vector_store %arg5[%c0_7, %c0_8], %10 {strides = array<i32>} : memref<16x32xbf16, #tpu.memory_space<vmem>>, vector<16x32xbf16>,
    %12 = vector.extract_strided_slice %5 {offsets = [0, 64], sizes = [16, 32], strides = [1, 1]} : vector<16x96xf32> to vector<16x32xf32>
    %13 = arith.truncf %12 : vector<16x32xf32> to vector<16x32xbf16>
    %c0_9 = arith.constant 0 : index
    %c0_10 = arith.constant 0 : index
    %14 = vector.load %arg6[%c0_9, %c0_10] : memref<16x32xbf16, #tpu.memory_space<vmem>>, vector<16x32xbf16>
    tpu.vector_store %arg6[%c0_9, %c0_10], %13 {strides = array<i32>} : memref<16x32xbf16, #tpu.memory_space<vmem>>, vector<16x32xbf16>,
    return
  }
  func.func @transform_0(%arg0: i32) -> (i32, i32) {
    %c0_i32 = arith.constant 0 : i32
    %c0_i32_0 = arith.constant 0 : i32
    return %arg0, %c0_i32 : i32, i32
  }
  func.func @transform_1(%arg0: i32) -> (i32, i32) {
    %c0_i32 = arith.constant 0 : i32
    %c0_i32_0 = arith.constant 0 : i32
    %c0_i32_1 = arith.constant 0 : i32
    return %c0_i32, %c0_i32_0 : i32, i32
  }
  func.func @transform_2(%arg0: i32) -> (i32, i32) {
    %c0_i32 = arith.constant 0 : i32
    %c0_i32_0 = arith.constant 0 : i32
    %c0_i32_1 = arith.constant 0 : i32
    return %c0_i32, %c0_i32_0 : i32, i32
  }
  func.func @transform_3(%arg0: i32) -> (i32, i32) {
    %c0_i32 = arith.constant 0 : i32
    %c0_i32_0 = arith.constant 0 : i32
    return %arg0, %c0_i32 : i32, i32
  }
  func.func @transform_4(%arg0: i32) -> (i32, i32) {
    %c0_i32 = arith.constant 0 : i32
    %c0_i32_0 = arith.constant 0 : i32
    return %arg0, %c0_i32 : i32, i32
  }
  func.func @transform_5(%arg0: i32) -> (i32, i32) {
    %c0_i32 = arith.constant 0 : i32
    %c0_i32_0 = arith.constant 0 : i32
    return %arg0, %c0_i32 : i32, i32
  }
}

module attributes {stable_mosaic.version = 11 : i64} {
  func.func @kernel(%arg0: i32, %arg1: i32, %arg2: memref<1x8x32xbf16, #tpu.memory_space<vmem>>, %arg3: memref<1x8x32xbf16, #tpu.memory_space<vmem>>, %arg4: memref<1x8x32xbf16, #tpu.memory_space<vmem>>, %arg5: memref<32x32xbf16, #tpu.memory_space<vmem>>, %arg6: memref<1x32xf32, #tpu.memory_space<vmem>>, %arg7: memref<1x8x32xf32, #tpu.memory_space<vmem>>, %arg8: memref<8x32xf32, #tpu.memory_space<vmem>>) attributes {dimension_semantics = [#tpu.dimension_semantics<parallel>, #tpu.dimension_semantics<parallel>], iteration_bounds = array<i64: 2, 1>, scalar_prefetch = 0 : i64, scratch_operands = 1 : i64, tpu.core_type = #tpu.core_type<tc>, window_params = [{transform_indices = @transform_0, window_bounds = array<i64: 1, 8, 32>}, {transform_indices = @transform_1, window_bounds = array<i64: 1, 8, 32>}, {transform_indices = @transform_2, window_bounds = array<i64: 1, 8, 32>}, {pipeline_mode = #tpu.pipeline_mode<synchronous>, transform_indices = @transform_3, window_bounds = array<i64: 32, 32>}, {pipeline_mode = #tpu.pipeline_mode<synchronous>, transform_indices = @transform_4, window_bounds = array<i64: 1, 32>}, {transform_indices = @transform_5, window_bounds = array<i64: 1, 8, 32>}]} {
    %c0 = arith.constant 0 : index
    %c0_0 = arith.constant 0 : index
    %c0_1 = arith.constant 0 : index
    %0 = vector.load %arg2[%c0, %c0_0, %c0_1] : memref<1x8x32xbf16, #tpu.memory_space<vmem>>, vector<1x8x32xbf16>
    %1 = vector.shape_cast %0 : vector<1x8x32xbf16> to vector<8x32xbf16>
    %c0_2 = arith.constant 0 : index
    %c0_3 = arith.constant 0 : index
    %c0_4 = arith.constant 0 : index
    %2 = vector.load %arg3[%c0_2, %c0_3, %c0_4] : memref<1x8x32xbf16, #tpu.memory_space<vmem>>, vector<1x8x32xbf16>
    %3 = vector.shape_cast %2 : vector<1x8x32xbf16> to vector<8x32xbf16>
    %c0_5 = arith.constant 0 : index
    %c0_6 = arith.constant 0 : index
    %c0_7 = arith.constant 0 : index
    %4 = vector.load %arg4[%c0_5, %c0_6, %c0_7] : memref<1x8x32xbf16, #tpu.memory_space<vmem>>, vector<1x8x32xbf16>
    %5 = vector.shape_cast %4 : vector<1x8x32xbf16> to vector<8x32xbf16>
    %6 = vector.extract_strided_slice %1 {offsets = [0, 0], sizes = [8, 8], strides = [1, 1]} : vector<8x32xbf16> to vector<8x8xbf16>
    %7 = vector.extract_strided_slice %3 {offsets = [0, 0], sizes = [8, 8], strides = [1, 1]} : vector<8x32xbf16> to vector<8x8xbf16>
    %cst = arith.constant dense<0.000000e+00> : vector<8x8xf32>
    %8 = tpu.matmul %6, %7, %cst {dimension_numbers = #tpu.dot_dimension_numbers<[1], [1], [0], [0], [0, 0, 1, 0], [], []>} : vector<8x8xbf16>, vector<8x8xbf16>, vector<8x8xf32> -> vector<8x8xf32>
    %cst_8 = arith.constant dense<0xFF800000> : vector<8xf32>
    %9 = vector.multi_reduction <maximumf>, %8, %cst_8 [1] : vector<8x8xf32> to vector<8xf32>
    %10 = vector.shape_cast %9 : vector<8xf32> to vector<8x1xf32>
    %11 = vector.broadcast %10 : vector<8x1xf32> to vector<8x8xf32>
    %12 = arith.subf %8, %11 : vector<8x8xf32>
    %13 = math.exp %12 : vector<8x8xf32>
    %cst_9 = arith.constant dense<0.000000e+00> : vector<8xf32>
    %14 = vector.multi_reduction <add>, %13, %cst_9 [1] : vector<8x8xf32> to vector<8xf32>
    %15 = vector.shape_cast %14 : vector<8xf32> to vector<8x1xf32>
    %16 = tpu.reciprocal %15 {approx = true} : vector<8x1xf32> -> vector<8x1xf32>
    %17 = vector.broadcast %16 : vector<8x1xf32> to vector<8x8xf32>
    %18 = arith.mulf %13, %17 : vector<8x8xf32>
    %19 = arith.truncf %18 : vector<8x8xf32> to vector<8x8xbf16>
    %20 = vector.extract_strided_slice %5 {offsets = [0, 0], sizes = [8, 8], strides = [1, 1]} : vector<8x32xbf16> to vector<8x8xbf16>
    %cst_10 = arith.constant dense<0.000000e+00> : vector<8x8xf32>
    %21 = tpu.matmul %19, %20, %cst_10 {dimension_numbers = #tpu.dot_dimension_numbers<[1], [0], [0], [1], [0, 0, 1, 1], [], []>} : vector<8x8xbf16>, vector<8x8xbf16>, vector<8x8xf32> -> vector<8x8xf32>
    %c0_11 = arith.constant 0 : index
    %c0_12 = arith.constant 0 : index
    %22 = vector.load %arg8[%c0_11, %c0_12] : memref<8x32xf32, #tpu.memory_space<vmem>>, vector<8x8xf32>
    tpu.vector_store %arg8[%c0_11, %c0_12], %21 {strides = array<i32>} : memref<8x32xf32, #tpu.memory_space<vmem>>, vector<8x8xf32>,
    %23 = vector.extract_strided_slice %1 {offsets = [0, 8], sizes = [8, 8], strides = [1, 1]} : vector<8x32xbf16> to vector<8x8xbf16>
    %24 = vector.extract_strided_slice %3 {offsets = [0, 8], sizes = [8, 8], strides = [1, 1]} : vector<8x32xbf16> to vector<8x8xbf16>
    %cst_13 = arith.constant dense<0.000000e+00> : vector<8x8xf32>
    %25 = tpu.matmul %23, %24, %cst_13 {dimension_numbers = #tpu.dot_dimension_numbers<[1], [1], [0], [0], [0, 0, 1, 0], [], []>} : vector<8x8xbf16>, vector<8x8xbf16>, vector<8x8xf32> -> vector<8x8xf32>
    %cst_14 = arith.constant dense<0xFF800000> : vector<8xf32>
    %26 = vector.multi_reduction <maximumf>, %25, %cst_14 [1] : vector<8x8xf32> to vector<8xf32>
    %27 = vector.shape_cast %26 : vector<8xf32> to vector<8x1xf32>
    %28 = vector.broadcast %27 : vector<8x1xf32> to vector<8x8xf32>
    %29 = arith.subf %25, %28 : vector<8x8xf32>
    %30 = math.exp %29 : vector<8x8xf32>
    %cst_15 = arith.constant dense<0.000000e+00> : vector<8xf32>
    %31 = vector.multi_reduction <add>, %30, %cst_15 [1] : vector<8x8xf32> to vector<8xf32>
    %32 = vector.shape_cast %31 : vector<8xf32> to vector<8x1xf32>
    %33 = tpu.reciprocal %32 {approx = true} : vector<8x1xf32> -> vector<8x1xf32>
    %34 = vector.broadcast %33 : vector<8x1xf32> to vector<8x8xf32>
    %35 = arith.mulf %30, %34 : vector<8x8xf32>
    %36 = arith.truncf %35 : vector<8x8xf32> to vector<8x8xbf16>
    %37 = vector.extract_strided_slice %5 {offsets = [0, 8], sizes = [8, 8], strides = [1, 1]} : vector<8x32xbf16> to vector<8x8xbf16>
    %cst_16 = arith.constant dense<0.000000e+00> : vector<8x8xf32>
    %38 = tpu.matmul %36, %37, %cst_16 {dimension_numbers = #tpu.dot_dimension_numbers<[1], [0], [0], [1], [0, 0, 1, 1], [], []>} : vector<8x8xbf16>, vector<8x8xbf16>, vector<8x8xf32> -> vector<8x8xf32>
    %c0_17 = arith.constant 0 : index
    %c8 = arith.constant 8 : index
    %39 = vector.load %arg8[%c0_17, %c8] : memref<8x32xf32, #tpu.memory_space<vmem>>, vector<8x8xf32>
    tpu.vector_store %arg8[%c0_17, %c8], %38 {strides = array<i32>} : memref<8x32xf32, #tpu.memory_space<vmem>>, vector<8x8xf32>,
    %40 = vector.extract_strided_slice %1 {offsets = [0, 16], sizes = [8, 8], strides = [1, 1]} : vector<8x32xbf16> to vector<8x8xbf16>
    %41 = vector.extract_strided_slice %3 {offsets = [0, 16], sizes = [8, 8], strides = [1, 1]} : vector<8x32xbf16> to vector<8x8xbf16>
    %cst_18 = arith.constant dense<0.000000e+00> : vector<8x8xf32>
    %42 = tpu.matmul %40, %41, %cst_18 {dimension_numbers = #tpu.dot_dimension_numbers<[1], [1], [0], [0], [0, 0, 1, 0], [], []>} : vector<8x8xbf16>, vector<8x8xbf16>, vector<8x8xf32> -> vector<8x8xf32>
    %cst_19 = arith.constant dense<0xFF800000> : vector<8xf32>
    %43 = vector.multi_reduction <maximumf>, %42, %cst_19 [1] : vector<8x8xf32> to vector<8xf32>
    %44 = vector.shape_cast %43 : vector<8xf32> to vector<8x1xf32>
    %45 = vector.broadcast %44 : vector<8x1xf32> to vector<8x8xf32>
    %46 = arith.subf %42, %45 : vector<8x8xf32>
    %47 = math.exp %46 : vector<8x8xf32>
    %cst_20 = arith.constant dense<0.000000e+00> : vector<8xf32>
    %48 = vector.multi_reduction <add>, %47, %cst_20 [1] : vector<8x8xf32> to vector<8xf32>
    %49 = vector.shape_cast %48 : vector<8xf32> to vector<8x1xf32>
    %50 = tpu.reciprocal %49 {approx = true} : vector<8x1xf32> -> vector<8x1xf32>
    %51 = vector.broadcast %50 : vector<8x1xf32> to vector<8x8xf32>
    %52 = arith.mulf %47, %51 : vector<8x8xf32>
    %53 = arith.truncf %52 : vector<8x8xf32> to vector<8x8xbf16>
    %54 = vector.extract_strided_slice %5 {offsets = [0, 16], sizes = [8, 8], strides = [1, 1]} : vector<8x32xbf16> to vector<8x8xbf16>
    %cst_21 = arith.constant dense<0.000000e+00> : vector<8x8xf32>
    %55 = tpu.matmul %53, %54, %cst_21 {dimension_numbers = #tpu.dot_dimension_numbers<[1], [0], [0], [1], [0, 0, 1, 1], [], []>} : vector<8x8xbf16>, vector<8x8xbf16>, vector<8x8xf32> -> vector<8x8xf32>
    %c0_22 = arith.constant 0 : index
    %c16 = arith.constant 16 : index
    %56 = vector.load %arg8[%c0_22, %c16] : memref<8x32xf32, #tpu.memory_space<vmem>>, vector<8x8xf32>
    tpu.vector_store %arg8[%c0_22, %c16], %55 {strides = array<i32>} : memref<8x32xf32, #tpu.memory_space<vmem>>, vector<8x8xf32>,
    %57 = vector.extract_strided_slice %1 {offsets = [0, 24], sizes = [8, 8], strides = [1, 1]} : vector<8x32xbf16> to vector<8x8xbf16>
    %58 = vector.extract_strided_slice %3 {offsets = [0, 24], sizes = [8, 8], strides = [1, 1]} : vector<8x32xbf16> to vector<8x8xbf16>
    %cst_23 = arith.constant dense<0.000000e+00> : vector<8x8xf32>
    %59 = tpu.matmul %57, %58, %cst_23 {dimension_numbers = #tpu.dot_dimension_numbers<[1], [1], [0], [0], [0, 0, 1, 0], [], []>} : vector<8x8xbf16>, vector<8x8xbf16>, vector<8x8xf32> -> vector<8x8xf32>
    %cst_24 = arith.constant dense<0xFF800000> : vector<8xf32>
    %60 = vector.multi_reduction <maximumf>, %59, %cst_24 [1] : vector<8x8xf32> to vector<8xf32>
    %61 = vector.shape_cast %60 : vector<8xf32> to vector<8x1xf32>
    %62 = vector.broadcast %61 : vector<8x1xf32> to vector<8x8xf32>
    %63 = arith.subf %59, %62 : vector<8x8xf32>
    %64 = math.exp %63 : vector<8x8xf32>
    %cst_25 = arith.constant dense<0.000000e+00> : vector<8xf32>
    %65 = vector.multi_reduction <add>, %64, %cst_25 [1] : vector<8x8xf32> to vector<8xf32>
    %66 = vector.shape_cast %65 : vector<8xf32> to vector<8x1xf32>
    %67 = tpu.reciprocal %66 {approx = true} : vector<8x1xf32> -> vector<8x1xf32>
    %68 = vector.broadcast %67 : vector<8x1xf32> to vector<8x8xf32>
    %69 = arith.mulf %64, %68 : vector<8x8xf32>
    %70 = arith.truncf %69 : vector<8x8xf32> to vector<8x8xbf16>
    %71 = vector.extract_strided_slice %5 {offsets = [0, 24], sizes = [8, 8], strides = [1, 1]} : vector<8x32xbf16> to vector<8x8xbf16>
    %cst_26 = arith.constant dense<0.000000e+00> : vector<8x8xf32>
    %72 = tpu.matmul %70, %71, %cst_26 {dimension_numbers = #tpu.dot_dimension_numbers<[1], [0], [0], [1], [0, 0, 1, 1], [], []>} : vector<8x8xbf16>, vector<8x8xbf16>, vector<8x8xf32> -> vector<8x8xf32>
    %c0_27 = arith.constant 0 : index
    %c24 = arith.constant 24 : index
    %73 = vector.load %arg8[%c0_27, %c24] : memref<8x32xf32, #tpu.memory_space<vmem>>, vector<8x8xf32>
    tpu.vector_store %arg8[%c0_27, %c24], %72 {strides = array<i32>} : memref<8x32xf32, #tpu.memory_space<vmem>>, vector<8x8xf32>,
    %c0_28 = arith.constant 0 : index
    %c0_29 = arith.constant 0 : index
    %74 = vector.load %arg8[%c0_28, %c0_29] : memref<8x32xf32, #tpu.memory_space<vmem>>, vector<8x32xf32>
    %75 = arith.truncf %74 : vector<8x32xf32> to vector<8x32xbf16>
    %c0_30 = arith.constant 0 : index
    %c0_31 = arith.constant 0 : index
    %76 = vector.load %arg5[%c0_30, %c0_31] : memref<32x32xbf16, #tpu.memory_space<vmem>>, vector<32x32xbf16>
    %cst_32 = arith.constant dense<0.000000e+00> : vector<8x32xf32>
    %77 = tpu.matmul %75, %76, %cst_32 {dimension_numbers = #tpu.dot_dimension_numbers<[1], [0], [0], [1], [0, 0, 1, 1], [], []>} : vector<8x32xbf16>, vector<32x32xbf16>, vector<8x32xf32> -> vector<8x32xf32>
    %c0_33 = arith.constant 0 : index
    %c0_34 = arith.constant 0 : index
    %78 = vector.load %arg6[%c0_33, %c0_34] : memref<1x32xf32, #tpu.memory_space<vmem>>, vector<1x32xf32>
    %79 = vector.broadcast %78 : vector<1x32xf32> to vector<8x32xf32>
    %80 = arith.addf %77, %79 : vector<8x32xf32>
    %c0_35 = arith.constant 0 : index
    %c0_36 = arith.constant 0 : index
    %c0_37 = arith.constant 0 : index
    %81 = vector.load %arg7[%c0_35, %c0_36, %c0_37] : memref<1x8x32xf32, #tpu.memory_space<vmem>>, vector<1x8x32xf32>
    %82 = vector.shape_cast %81 : vector<1x8x32xf32> to vector<8x32xf32>
    %83 = vector.shape_cast %80 : vector<8x32xf32> to vector<1x8x32xf32>
    tpu.vector_store %arg7[%c0_35, %c0_36, %c0_37], %83 {strides = array<i32>} : memref<1x8x32xf32, #tpu.memory_space<vmem>>, vector<1x8x32xf32>,
    return
  }
  func.func @transform_0(%arg0: i32, %arg1: i32) -> (i32, i32, i32) {
    %c0_i32 = arith.constant 0 : i32
    %c0_i32_0 = arith.constant 0 : i32
    return %arg0, %arg1, %c0_i32 : i32, i32, i32
  }
  func.func @transform_1(%arg0: i32, %arg1: i32) -> (i32, i32, i32) {
    %c0_i32 = arith.constant 0 : i32
    %c0_i32_0 = arith.constant 0 : i32
    %c0_i32_1 = arith.constant 0 : i32
    return %arg0, %c0_i32, %c0_i32_0 : i32, i32, i32
  }
  func.func @transform_2(%arg0: i32, %arg1: i32) -> (i32, i32, i32) {
    %c0_i32 = arith.constant 0 : i32
    %c0_i32_0 = arith.constant 0 : i32
    %c0_i32_1 = arith.constant 0 : i32
    return %arg0, %c0_i32, %c0_i32_0 : i32, i32, i32
  }
  func.func @transform_3(%arg0: i32, %arg1: i32) -> (i32, i32) {
    %c0_i32 = arith.constant 0 : i32
    %c0_i32_0 = arith.constant 0 : i32
    %c0_i32_1 = arith.constant 0 : i32
    return %c0_i32, %c0_i32_0 : i32, i32
  }
  func.func @transform_4(%arg0: i32, %arg1: i32) -> (i32, i32) {
    %c0_i32 = arith.constant 0 : i32
    %c0_i32_0 = arith.constant 0 : i32
    %c0_i32_1 = arith.constant 0 : i32
    return %c0_i32, %c0_i32_0 : i32, i32
  }
  func.func @transform_5(%arg0: i32, %arg1: i32) -> (i32, i32, i32) {
    %c0_i32 = arith.constant 0 : i32
    %c0_i32_0 = arith.constant 0 : i32
    return %arg0, %arg1, %c0_i32 : i32, i32, i32
  }
}

</mosaic_0001>

<bundles_post_ra>
// kernel: multihead_forward.2
= control target key start
LH: loop header
LB: loop body
LE: loop exit
PB: predicated region body
PF: predicated region fallthrough
CT: control target
= control target key end

     0   :  { %v159_v0 = vmov 0.0   ;;  %vm160_vm0 = vmmov 0   ;;  %vm48_vm1 = vcmask 261120   ;;  %vm101_vm2 = vcmask 257024   ;;  %s162_s27 = smov 96   ;;  %s229_s1 = inlined_call_operand.vmem [shape: bf16[32,96], index: 1, kind: input, shape index: {}]   ;;  %s230_s0 = inlined_call_operand.vmem [shape: bf16[16,32], index: 0, kind: input, shape index: {}]   ;;  %s231_s2 = inlined_call_operand.vmem [shape: f32[1,96], index: 2, kind: input, shape index: {}]   ;;  %s232_s3 = inlined_call_operand.vmem [shape: bf16[16,32], index: 3, kind: output, shape index: {0}]   ;;  %s233_s5 = inlined_call_operand.vmem [shape: bf16[16,32], index: 5, kind: output, shape index: {2}]   ;;  %s234_s4 = inlined_call_operand.vmem [shape: bf16[16,32], index: 4, kind: output, shape index: {1}]  }
   0x1   :  { %144 = vmatprep.subr.bf16.mxu0 %v159_v0  ;;  %v156_v1 = vld [vmem:[%s229_s1] sm:$0xff]   ;;  %148 = vmatprep.mubr.msk.bf16.mxu0 %vm160_vm0, %v159_v0  ;;  %v157_v2 = vld [vmem:[%s229_s1 + $0x8] sm:$0xff]  }
   0x2   :  { %145 = vmatpush3.bf16.msra.mxu0 %v156_v1  ;;  %v158_v3 = vld [vmem:[%s230_s0] sm:$0xff]   ;;  %s161_s0 = smov 64  }
   0x3   :  { %146 = vmatprep.subr.bf16.mxu0 %v159_v0  ;;  %v132_v4 = vld [vmem:[%s231_s2] ss:$0 sm:$0xff] }
   0x6   :  { %147 = vmatpush3.bf16.msra.mxu0 %v157_v2 }
   0x9   :  { %149 = vmatmul.mubr.msk.bf16.vlgmr.msra.gmra.mrb[0].mxu0 %vm48_vm1, %v158_v3 }
  0xdc   :  { %v86_v5 = vpop.f32.mrb[0].mxu0 }
  0xdd   :  { %v87_v6 = vadd.f32 %v132_v4, %v86_v5  ;;  %v150_v7 = vpop.f32.mrb[1].mxu0 }
  0xde   :  { %v89_v8 = vpop.f32.mrb[2].mxu0 }
  0xdf   :  { %v139_v9 = vpack.c.bf16 %v87_v6, %v87_v6  ;;  %v90_v10 = vadd.f32 %v132_v4, %v89_v8  ;;  %v151_v11 = vpop.f32.mrb[3].mxu0 }
  0xe1   :  { %102 = vst.msk [vmem:[%s232_s3] sm:$0xf] %vm101_vm2, %v139_v9  ;;  %v140_v12 = vpack.c.bf16 %v90_v10, %v90_v10  ;;  %112 = vrot.lane.b32.xlu1 %v139_v9, %s161_s0  ;;  %104 = vrot.lane.b32.xlu0 %v139_v9, %s162_s27 }
  0xe3   :  { %103 = vst.msk [vmem:[%s232_s3 + $0x4] sm:$0xf] %vm101_vm2, %v140_v12 }
  0xe5   :  { %114 = vrot.lane.b32.xlu1 %v140_v12, %s161_s0  ;;  %106 = vrot.lane.b32.xlu0 %v140_v12, %s162_s27 }
 0x153   :  { %v113_v13 = vpop.permute.xlu1 %112  ;;  %v105_v14 = vpop.permute.xlu0 %104 }
 0x154   :  { %118 = vst.msk [vmem:[%s233_s5] sm:$0xf] %vm101_vm2, %v113_v13  ;;  %110 = vst.msk [vmem:[%s234_s4] sm:$0xf] %vm101_vm2, %v105_v14 }
 0x157   :  { %v115_v15 = vpop.permute.xlu1 %114  ;;  %v107_v16 = vpop.permute.xlu0 %106 }
 0x158   :  { %119 = vst.msk [vmem:[%s233_s5 + $0x4] sm:$0xf] %vm101_vm2, %v115_v15  ;;  %111 = vst.msk [vmem:[%s234_s4 + $0x4] sm:$0xf] %vm101_vm2, %v107_v16 }

// kernel: multihead_forward.3
= control target key start
LH: loop header
LB: loop body
LE: loop exit
PB: predicated region body
PF: predicated region fallthrough
CT: control target
= control target key end

     0   :  { %10 = vsyncpa [#allocation4], 0  ;;  %s1434_s0 = inlined_call_operand.vmem [shape: bf16[2,8,32], index: 0, kind: input, shape index: {}]   ;;  %s1435_s1 = inlined_call_operand.vmem [shape: bf16[2,8,32], index: 1, kind: input, shape index: {}]   ;;  %s1436_s2 = inlined_call_operand.vmem [shape: bf16[2,8,32], index: 2, kind: input, shape index: {}]   ;;  %s1437_s3 = inlined_call_operand.vmem [shape: bf16[32,32], index: 3, kind: input, shape index: {}]   ;;  %s1438_s4 = inlined_call_operand.vmem [shape: f32[1,32], index: 4, kind: input, shape index: {}]   ;;  %s1439_s5 = inlined_call_operand.hbm [shape: f32[2,8,32], index: 5, kind: output, shape index: {}]  }
   0x1   :  { %12 = vsyncpa [#allocation4 + $0x1], 0  ;;  %s1233_s18 = smov 0   ;;  %s1235_s19 = smov 0  }
   0x2   :  { %s1237_s20 = smov 0   ;;  %s1239_s21 = smov 0  }
   0x3   :  { %s1241_s22 = smov 0   ;;  %s1243_s23 = smov 0  }
   0x4 LB: > { %s927_s24 = sadd.s32 4294967295, %s1192_s23   ;;  %s928_s25 = sadd.s32 4294967294, %s1192_s23   ;;  %s1192_s23 = sphi %s1243_s23, %s18_s23   ;;  %s1188_s22 = sphi %s1241_s22, %s1446_s22   ;;  %s1184_s21 = sphi %s1239_s21, %s1445_s21   ;;  %s1180_s20 = sphi %s1237_s20, %s1444_s20   ;;  %s1176_s19 = sphi %s1235_s19, %s1443_s19   ;;  %s1172_s18 = sphi %s1233_s18, %s1442_s18  }
   0x5   : > { %s30_s26 = sadd.s32 1, %s1188_s22  ;;  %s161_s27 = sadd.s32 1, %s1180_s20 }
   0x6   : > { %p32_p0 = scmp.ge.s32.totalorder %s30_s26, 2  ;;  %p171_p1 = scmp.ne.s32.totalorder %s1180_s20, %s1176_s19 }
   0x7   : > { %p172_p2 = scmp.eq.s32.totalorder %s927_s24, 1  ;;  %p177_p3 = scmp.ne.s32.totalorder %s1176_s19, %s1172_s18 }
   0x8   : > { %s1448_s26 = smov (%p32_p0, %s30_s26), 0  ;;  %p178_p5 = scmp.eq.s32.totalorder %s928_s25, 1 }
   0x9   : > { %p1273_p4 = por %p172_p2, %p171_p1  ;;  %s156_s29 = ssub.s32 %s1188_s22, %s1448_s26 }
   0xa   : > { %p931_p6 = scmp.ge.s32.totalorder %s1192_s23, 1  ;;  %p159_p7 = scmp.eq.s32.totalorder %s156_s29, 0 }
   0xb   : > { %p1280_p8 = por %p178_p5, %p177_p3  ;;  %p226_p9 = scmp.lt.s32.totalorder %s1192_s23, 3 }
   0xc   : > { %s1286_s6 = scalar_select %p159_p7, %s1180_s20, %s161_s27  }
   0xd   : > { %p227_p10 = pnand %p931_p6, %p226_p9 }
   0xe   : > { %p264_p11 = scmp.lt.s32.totalorder (!%p227_p10), %s1184_s21, 1  ;;  %v1194_v0 = vmov (!%p227_p10), 0.0   ;;  %vm1195_vm0 = vmmov (!%p227_p10), 0   ;;  %vm283_vm1 = vcmask (!%p227_p10), 64512   ;;  %s1196_s15 = smov (!%p227_p10), 120   ;;  %vm345_vm2 = vcmask (!%p227_p10), 1043456  }
   0xf   : > { %230 = sbr.rel (%p227_p10) target bundleno = 1717 (0x6b5), region = 40  ;;  %974 = vmatprep.subr.bf16.mxu0 (!%p227_p10), %v1194_v0  ;;  %976 = vmatprep.mubr.msk.bf16.mxu0 (!%p227_p10), %vm1195_vm0, %v1194_v0  ;;  %s1197_s16 = smov (!%p227_p10), 112   ;;  %vm513_vm3 = vcmask (!%p227_p10), 130112   ;;  %vm629_vm4 = vcmask (!%p227_p10), 195712   ;;  %vm745_vm5 = vcmask (!%p227_p10), 261312   ;;  %vm772_vm6 = vcmask (!%p227_p10), 261120  }
  0x10   : > { %980 = vmatprep.subr.bf16.mxu1 (!%p227_p10), %v1194_v0  ;;  %982 = vmatprep.mubr.msk.bf16.mxu1 (!%p227_p10), %vm1195_vm0, %v1194_v0  ;;  %s1198_s17 = smov (!%p227_p10), 104   ;;  %s1199_s29 = smov (!%p227_p10), 8  }
  0x11   : > { %s1201_s12 = smov (!%p227_p10), 24   ;;  %s261_s13 = sand.u32 (!%p227_p10), 1, %s1176_s19  }
  0x12   : > { %s1202_s9 = smov (!%p227_p10), [#allocation3]  }
  0x13   : > { %s1118_s10 = sshll.u32 (!%p227_p10), %s1202_s9, 4  ;;  %s1119_s10 = int_to_ptr.vmem [resolvable:$false] %s1118_s10 }
  0x16   : > { %s265_s7 = scalar_select %p264_p11, %s1184_s21, 1 }
  0x18   : > { %s1296_s8 = sshll.u32 %s265_s7, 2  ;;  %s1200_s7 = smov 16  }
  0x19   : > { %s274_s11 = scalar_lea.vmem %s1435_s1, %s1296_s8  ;;  %s270_s14 = scalar_lea.vmem %s1434_s0, %s1296_s8 }
  0x1a   : > { %v281_v1 = vld [vmem:[%s274_s11] sm:$0xf]  ;;  %s278_s27 = scalar_lea.vmem %s1436_s2, %s1296_s8  ;;  %s1120_s11 = scalar_lea.vmem %s1119_s10, 256 }
  0x1b   : > { %v288_v2 = vsel %vm283_vm1, %v281_v1, 0  ;;  %v280_v3 = vld [vmem:[%s270_s14] sm:$0xf]  ;;  %v939_v9 = vcombine.low %v281_v1, %v281_v1  ;;  %s932_s14 = sshll.u32 %s261_s13, 3 }
  0x1c   : > { %975 = vmatpush3.bf16.xpose.msra.mxu0 %v288_v2  ;;  %v938_v10 = vcombine.low %v280_v3, %v280_v3  ;;  %v1322_v16 = vld [vmem:[%s278_s27] sm:$0xf]  ;;  %s263_s24 = scalar_lea.vmem [#allocation3], %s932_s14 }
  0x1d   : > { %992 = vmatprep.subr.bf16.mxu0 %v1194_v0  ;;  %398 = vrot.lane.b32.xlu1 %v939_v9, %s1196_s15  ;;  %v347_v17 = vsel %vm345_vm2, %v1322_v16, 0  ;;  %v941_v60 = vcombine.low %v1322_v16, %v1322_v16  ;;  %s832_s25 = sshll.u32 %s263_s24, 4  ;;  %s1388_s25 = int_to_ptr.vmem [resolvable:$true] %s832_s25 }
  0x1e   : > { %981 = vmatpush3.bf16.msra.mxu1 %v347_v17  ;;  %s1114_s8 = scalar_lea.vmem %s1388_s25, 128  ;;  %p1121_p1 = scmp.lt.s32.totalorder %s1388_s25, %s1119_s10 }
  0x1f   : > { %986 = vmatprep.subr.bf16.mxu1 %v1194_v0  ;;  %p1115_p12 = scmp.ne.s32.totalorder %s1388_s25, %s1114_s8  ;;  %p1122_p2 = scmp.lt.s32.totalorder %s1120_s11, %s1114_s8 }
  0x21   : > { %393 = vrot.lane.b32.xlu1 %v938_v10, %s1196_s15  ;;  %p1116_p13 = pnand %p1115_p12, %p1273_p4  ;;  %p1123_p3 = por %p1122_p2, %p1121_p1 }
  0x23   : > { %977 = vmatmul.mubr.msk.bf16.vlgmr.msra.gmra.mrb[0].mxu0 %vm283_vm1, %v280_v3  ;;  %p1117_p0 = pneg %p1116_p13 }
  0x24   : > { %994 = vmatprep.mubr.msk.bf16.mxu0 %vm1195_vm0, %v1194_v0 }
  0x25   : > { %515 = vrot.lane.b32.xlu1 %v938_v10, %s1197_s16  ;;  %p1124_p5 = pnand %p1123_p3, %p1117_p0 }
  0x29   : > { %633 = vrot.lane.b32.xlu1 %v939_v9, %s1198_s17 }
  0x2d   : > { %631 = vrot.lane.b32.xlu1 %v938_v10, %s1198_s17 }
  0x8f   : > { %v399_v20 = vpop.permute.xlu1 %398 }
  0x90   : > { %v404_v22 = vsel %vm283_vm1, %v399_v20, 0 }
  0x93   : > { %v394_v24 = vpop.permute.xlu1 %393 }
  0x97   : > { %v516_v26 = vpop.permute.xlu1 %515 }
  0x9b   : > { %v634_v28 = vpop.permute.xlu1 %633 }
  0x9c   : > { %v639_v29 = vsel %vm283_vm1, %v634_v28, 0 }
  0x9f   : > { %v632_v30 = vpop.permute.xlu1 %631 }
  0xf6   : > { %v324_v4 = vpop.f32.mrb[0].mxu0 }
  0xf7   : > { %v978_v5 = vpop.f32.mrb[1].mxu0  ;;  %v330_v6 = vsel %vm283_vm1, %v324_v4, -inf }
  0xf8   : > { %331 = vmax.xlane.f32.xlu0 %v330_v6  ;;  %v327_v7 = vpop.f32.mrb[2].mxu0 }
  0xf9   : > { %v979_v8 = vpop.f32.mrb[3].mxu0 }
 0x185   : > { %v332_v11 = vpop.xlane.xlu0 %331 }
 0x186   : > { %v333_v12 = vsub.f32 %v324_v4, %v332_v11 }
 0x188   : > { %v334_v13 = vmul.f32 1.442695, %v333_v12 }
 0x18a   : > { %1098 = vpow2.f32 %v334_v13 }
 0x194   : > { %v1099_v14 = vpop.eup %1098 }
 0x195   : > { %v336_v15 = vsel %vm283_vm1, %v1099_v14, 0.0 }
 0x196   : > { %337 = vadd.xlane.f32.xlu0 %v336_v15 }
 0x1ac   : > { %517 = vrot.lane.b32.xlu0 %v939_v9, %s1197_s16 }
 0x223   : > { %v338_v18 = vpop.xlane.xlu0 %337 }
 0x224   : > { %1100 = vrcp.f32 %v338_v18 }
 0x227   : > { %v518_v25 = vpop.permute.xlu0 %517 }
 0x228   : > { %v523_v27 = vsel %vm283_vm1, %v518_v25, 0 }
 0x22e   : > { %v1101_v19 = vpop.eup %1100 }
 0x22f   : > { %v340_v21 = vmul.f32 %v1101_v19, %v1099_v14 }
 0x231   : > { %v341_v23 = vpack.c.bf16 %v340_v21, %v340_v21 }
 0x233   : > { %983 = vmatmul.mubr.msk.bf16.vlgmr.msra.gmra.mrb[0].mxu1 %vm283_vm1, %v341_v23 }
 0x234   : > { %987 = vmatpush3.bf16.xpose.msra.mxu1 %v404_v22  ;;  %988 = vmatprep.mubr.msk.bf16.mxu1 %vm1195_vm0, %v1194_v0 }
 0x235   : > { %998 = vmatprep.subr.bf16.mxu1 %v1194_v0 }
 0x23b   : > { %989 = vmatmul.mubr.msk.bf16.vlgmr.msra.gmra.mrb[4].mxu1 %vm283_vm1, %v394_v24 }
 0x23c   : > { %999 = vmatpush3.bf16.xpose.msra.mxu1 %v523_v27  ;;  %1000 = vmatprep.mubr.msk.bf16.mxu1 %vm1195_vm0, %v1194_v0 }
 0x23d   : > { %1010 = vmatprep.subr.bf16.mxu1 %v1194_v0 }
 0x243   : > { %1001 = vmatmul.mubr.msk.bf16.vlgmr.msra.gmra.mrb[8].mxu1 %vm283_vm1, %v516_v26 }
 0x244   : > { %1011 = vmatpush3.bf16.xpose.msra.mxu1 %v639_v29  ;;  %1012 = vmatprep.mubr.msk.bf16.mxu1 %vm1195_vm0, %v1194_v0  ;;  %v1096_v29 = vld [vmem:[%s1437_s3] sm:$0xff]  }
 0x245   : > { %1022 = vmatprep.subr.bf16.mxu1 %v1194_v0 }
 0x24b   : > { %1013 = vmatmul.mubr.msk.bf16.vlgmr.msra.gmra.mrb[12].mxu1 %vm283_vm1, %v632_v30  ;;  %v1097_v30 = vld [vmem:[%s1437_s3 + $0x8] sm:$0xff]  }
 0x24c   : > { %1026 = vmatprep.mubr.msk.bf16.mxu1 %vm1195_vm0, %v1194_v0  ;;  %1023 = vmatpush3.bf16.msra.mxu1 %v1096_v29 }
 0x24d   : > { %1024 = vmatprep.subr.bf16.mxu1 %v1194_v0 }
 0x250   : > { %1025 = vmatpush3.bf16.msra.mxu1 %v1097_v30 }
 0x306   : > { %v383_v31 = vpop.f32.mrb[0].mxu1 }
 0x307   : > { %389 = vst.msk [vmem:[#allocation2] sm:$0xff] %vm283_vm1, %v383_v31  ;;  %v984_v32 = vpop.f32.mrb[1].mxu1 }
 0x308   : > { %v386_v33 = vpop.f32.mrb[2].mxu1 }
 0x309   : > { %v985_v34 = vpop.f32.mrb[3].mxu1 }
 0x30e   : > { %v440_v35 = vpop.f32.mrb[4].mxu1 }
 0x30f   : > { %v990_v36 = vpop.f32.mrb[5].mxu1  ;;  %v446_v37 = vsel %vm283_vm1, %v440_v35, -inf }
 0x310   : > { %447 = vmax.xlane.f32.xlu1 %v446_v37  ;;  %v443_v38 = vpop.f32.mrb[6].mxu1 }
 0x311   : > { %v991_v39 = vpop.f32.mrb[7].mxu1 }
 0x312   : > { %v947_v39 = vld [vmem:[%s1438_s4] ss:$0 sm:$0xff] }
 0x316   : > { %v559_v40 = vpop.f32.mrb[8].mxu1 }
 0x317   : > { %v565_v41 = vsel %vm283_vm1, %v559_v40, -inf  ;;  %v1002_v42 = vpop.f32.mrb[9].mxu1 }
 0x318   : > { %566 = vmax.xlane.f32.xlu0 %v565_v41  ;;  %v562_v43 = vpop.f32.mrb[10].mxu1 }
 0x319   : > { %v1003_v44 = vpop.f32.mrb[11].mxu1 }
 0x31e   : > { %v675_v45 = vpop.f32.mrb[12].mxu1 }
 0x31f   : > { %v681_v46 = vsel %vm283_vm1, %v675_v45, -inf  ;;  %v1014_v47 = vpop.f32.mrb[13].mxu1 }
 0x320   : > { %682 = vmax.xlane.f32.xlu1 %v681_v46  ;;  %v678_v48 = vpop.f32.mrb[14].mxu1 }
 0x321   : > { %v1015_v49 = vpop.f32.mrb[15].mxu1 }
 0x39d   : > { %v448_v50 = vpop.xlane.xlu1 %447 }
 0x39e   : > { %v449_v51 = vsub.f32 %v440_v35, %v448_v50 }
 0x3a0   : > { %v450_v52 = vmul.f32 1.442695, %v449_v51 }
 0x3a2   : > { %1102 = vpow2.f32 %v450_v52 }
 0x3a5   : > { %v567_v53 = vpop.xlane.xlu0 %566 }
 0x3a6   : > { %v568_v54 = vsub.f32 %v559_v40, %v567_v53 }
 0x3a8   : > { %v569_v55 = vmul.f32 1.442695, %v568_v54 }
 0x3aa   : > { %1104 = vpow2.f32 %v569_v55 }
 0x3ac   : > { %v1103_v56 = vpop.eup %1102 }
 0x3ad   : > { %v452_v57 = vsel %vm283_vm1, %v1103_v56, 0.0  ;;  %v683_v61 = vpop.xlane.xlu1 %682 }
 0x3ae   : > { %453 = vadd.xlane.f32.xlu1 %v452_v57  ;;  %v684_v62 = vsub.f32 %v675_v45, %v683_v61 }
 0x3b0   : > { %v685_v63 = vmul.f32 1.442695, %v684_v62 }
 0x3b2   : > { %1106 = vpow2.f32 %v685_v63 }
 0x3b4   : > { %v1105_v58 = vpop.eup %1104 }
 0x3b5   : > { %v571_v59 = vsel %vm283_vm1, %v1105_v58, 0.0 }
 0x3b6   : > { %572 = vadd.xlane.f32.xlu0 %v571_v59 }
 0x3bc   : > { %v1107_v1 = vpop.eup %1106 }
 0x3bd   : > { %v687_v2 = vsel %vm283_vm1, %v1107_v1, 0.0 }
 0x3bf   : > { %577 = vrot.lane.b32.xlu1 %v941_v60, %s1197_s16 }
 0x3cc   : > { %461 = vrot.lane.b32.xlu0 %v941_v60, %s1196_s15 }
 0x3e3   : > { %688 = vadd.xlane.f32.xlu1 %v687_v2 }
 0x3f4   : > { %693 = vrot.lane.b32.xlu1 %v941_v60, %s1198_s17  ;;  %s952_s17 = sshll.u32 %s1184_s21, 7  ;;  %s818_s21 = scalar_lea.sflag [#allocation4], %s261_s13 }
 0x43b   : > { %v454_v3 = vpop.xlane.xlu1 %453 }
 0x43c   : > { %1108 = vrcp.f32 %v454_v3 }
 0x43f   : > { %v578_v9 = vpop.permute.xlu1 %577 }
 0x440   : > { %v583_v11 = vsel %vm345_vm2, %v578_v9, 0 }
 0x443   : > { %v573_v4 = vpop.xlane.xlu0 %572 }
 0x444   : > { %1110 = vrcp.f32 %v573_v4 }
 0x446   : > { %v1109_v5 = vpop.eup %1108 }
 0x447   : > { %v456_v6 = vmul.f32 %v1109_v5, %v1103_v56  ;;  %v462_v7 = vpop.permute.xlu0 %461 }
 0x448   : > { %v467_v8 = vsel %vm345_vm2, %v462_v7, 0 }
 0x449   : > { %993 = vmatpush3.bf16.msra.mxu0 %v467_v8  ;;  %v457_v10 = vpack.c.bf16 %v456_v6, %v456_v6 }
 0x44a   : > { %1004 = vmatprep.subr.bf16.mxu0 %v1194_v0 }
 0x44c   : > { %995 = vmatmul.mubr.msk.bf16.vlgmr.msra.gmra.mrb[4].mxu0 %vm283_vm1, %v457_v10 }
 0x44d   : > { %1005 = vmatpush3.bf16.msra.mxu0 %v583_v11  ;;  %1006 = vmatprep.mubr.msk.bf16.mxu0 %vm1195_vm0, %v1194_v0 }
 0x44e   : > { %v1111_v12 = vpop.eup %1110  ;;  %1016 = vmatprep.subr.bf16.mxu0 %v1194_v0 }
 0x44f   : > { %v575_v13 = vmul.f32 %v1111_v12, %v1105_v58 }
 0x451   : > { %v576_v14 = vpack.c.bf16 %v575_v13, %v575_v13 }
 0x454   : > { %1007 = vmatmul.mubr.msk.bf16.vlgmr.msra.gmra.mrb[8].mxu0 %vm283_vm1, %v576_v14 }
 0x455   : > { %1018 = vmatprep.mubr.msk.bf16.mxu0 %vm1195_vm0, %v1194_v0 }
 0x470   : > { %v689_v15 = vpop.xlane.xlu1 %688 }
 0x471   : > { %1112 = vrcp.f32 %v689_v15 }
 0x474   : > { %v694_v16 = vpop.permute.xlu1 %693 }
 0x475   : > { %v699_v17 = vsel %vm345_vm2, %v694_v16, 0 }
 0x476   : > { %1017 = vmatpush3.bf16.msra.mxu0 %v699_v17 }
 0x47b   : > { %v1113_v18 = vpop.eup %1112 }
 0x47c   : > { %v691_v19 = vmul.f32 %v1113_v18, %v1107_v1 }
 0x47e   : > { %v692_v20 = vpack.c.bf16 %v691_v19, %v691_v19 }
 0x480   : > { %1019 = vmatmul.mubr.msk.bf16.vlgmr.msra.gmra.mrb[12].mxu0 %vm283_vm1, %v692_v20 }
 0x51f   : > { %v503_v21 = vpop.f32.mrb[4].mxu0 }
 0x520   : > { %510 = vrot.lane.b32.xlu0 %v503_v21, %s1199_s29  ;;  %v996_v22 = vpop.f32.mrb[5].mxu0 }
 0x521   : > { %v506_v23 = vpop.f32.mrb[6].mxu0 }
 0x522   : > { %v997_v24 = vpop.f32.mrb[7].mxu0 }
 0x527   : > { %v619_v25 = vpop.f32.mrb[8].mxu0 }
 0x528   : > { %626 = vrot.lane.b32.xlu1 %v619_v25, %s1200_s7  ;;  %v1008_v26 = vpop.f32.mrb[9].mxu0  ;;  %s1386_s7 = scalar_lea.hbm %s1439_s5, %s952_s17 }
 0x529   : > { %v622_v27 = vpop.f32.mrb[10].mxu0 }
 0x52a   : > { %v1009_v28 = vpop.f32.mrb[11].mxu0 }
 0x553   : > { %v735_v31 = vpop.f32.mrb[12].mxu0 }
 0x554   : > { %742 = vrot.lane.b32.xlu0 %v735_v31, %s1201_s12  ;;  %v1020_v32 = vpop.f32.mrb[13].mxu0 }
 0x555   : > { %v738_v33 = vpop.f32.mrb[14].mxu0 }
 0x556   : > { %v1021_v34 = vpop.f32.mrb[15].mxu0 }
 0x592   : > { %v511_v35 = vpop.permute.xlu0 %510 }
 0x593   : > { %514 = vst.msk [vmem:[#allocation2] sm:$0xff] %vm513_vm3, %v511_v35 }
 0x59a   : > { %v627_v36 = vpop.permute.xlu1 %626 }
 0x59b   : > { %630 = vst.msk [vmem:[#allocation2] sm:$0xff] %vm629_vm4, %v627_v36 }
 0x5c6   : > { %v743_v37 = vpop.permute.xlu0 %742 }
 0x5c7   : > { %746 = vst.msk [vmem:[#allocation2] sm:$0xff] %vm745_vm5, %v743_v37 }
 0x5ce   : > { %v747_v38 = vld [vmem:[#allocation2] sm:$0xff] }
 0x5cf   : > { %v748_v0 = vpack.c.bf16 %v747_v38, %v747_v38 }
 0x5d1   : > { %1027 = vmatmul.mubr.msk.bf16.vlgmr.msra.gmra.mrb[16].mxu1 %vm772_vm6, %v748_v0 }
 0x6a4   : > { %v810_v40 = vpop.f32.mrb[16].mxu1 }
 0x6a5   : > { %v811_v41 = vadd.f32 %v947_v39, %v810_v40  ;;  %v1028_v42 = vpop.f32.mrb[17].mxu1 }
 0x6a6   : > { %v813_v43 = vpop.f32.mrb[18].mxu1 }
 0x6a7   : > { %v1029_v44 = vpop.f32.mrb[19].mxu1  ;;  %816 = vst.msk [vmem:[%s263_s24] sm:$0xff] %vm772_vm6, %v811_v41 }
 0x6a8   : > { %1127 = shalt.err (!%p1124_p5)
}
 0x6a9   : > { %s1128_s12 = scalar_lea.hbm %s1386_s7, 128  ;;  %s1132_s15 = scalar_lea.hbm %s1439_s5, 256 }
 0x6aa   : > { %p1129_p6 = scmp.ne.s32.totalorder %s1386_s7, %s1128_s12  ;;  %p1133_p10 = scmp.lt.u32.totalorder %s1386_s7, %s1439_s5 }
 0x6ab   : > { %p1134_p11 = scmp.lt.u32.totalorder %s1132_s15, %s1128_s12  ;;  %p1136_p13 = scmp.lt.u32.totalorder %s1128_s12, %s1386_s7 }
 0x6ac   : > { %p1130_p7 = pnand %p1129_p6, %p1273_p4 }
 0x6ad   : > { %p1135_p12 = por %p1134_p11, %p1133_p10 }
 0x6ae   : > { %p1131_p9 = pneg %p1130_p7 }
 0x6af   : > { %p1137_p0 = por %p1136_p13, %p1135_p12 }
 0x6b1   : > { %p1138_p1 = pnand %p1137_p0, %p1131_p9 }
 0x6b3   : > { %1141 = shalt.err (!%p1138_p1)
}
 0x6b4   : > { %1030 = dma.vmem_to_hbm [thread:$0]  (%p1273_p4), %s1388_s25, 128, %s1386_s7, %s818_s21  }
 0x6b5 PF: > { %p1036_p2 = scmp.ge.s32.totalorder %s1192_s23, 2  ;;  %s844_s24 = sand.u32 1, %s1172_s18  }
 0x6b6   : > { %s845_s27 = scalar_lea.sflag [#allocation4], %s844_s24 }
 0x6b7   : > { %p1033_p3 = pnand %p1036_p2, %p1280_p8 }
 0x6b9   : > { %1167 = dma.done.wait (!%p1033_p3), %s845_s27, 128  }
 0x6ba   : > { %1169 = vsyncadd (!%p1033_p3), %s845_s27, 4294967168  ;;  %s18_s23 = sadd.s32 1, %s1192_s23   ;;  %s1442_s18 = smov %s1176_s19 }
 0x6bb   : > { %p15_p5 = scmp.ge.s32.totalorder %s18_s23, 4   ;;  %s1443_s19 = smov %s1180_s20 }
 0x6bc   : > { %s1444_s20 = smov %s1286_s6  ;;  %s1445_s21 = smov %s1188_s22 }
 0x6bd   : > { %s1446_s22 = smov %s1448_s26  ;;  %17 = sbr.rel (!%p15_p5) target bundleno = 4 (0x4), region = 81 }
 0x6c4   :  { %850 = vsyncpa [#allocation4], 1 }
 0x6c5   :  { %852 = vsyncpa [#allocation4 + $0x1], 1 }

</bundles_post_ra>
